<compile_context>
chip_gen: v7x
topology: tpu7x:2x2x1
jax: 0.10.0
libtpu: 0.0.40
codegen_flags: <defaults>
</compile_context>

<pallas_src>
import functools

import jax
import jax.numpy as jnp
from jax.experimental import pallas as pl
from jax.experimental.pallas import tpu as pltpu


_SUBLANE = 8                            # f32 sublane tile
_PAIR_QUANT = 512                       # phase-B padding quantum / j-chunk width
_ROW_BUDGET_BYTES = 2 * 1024 * 1024     # target f32 bytes of the (tm, C) phase-A block
_VMEM_LIMIT = 48 * 1024 * 1024          # scoped VMEM limit (fits v7x's 64 MiB physical)
_BIG = 1e30                             # padded-row sentinel (margins clamp to 0)


def _round_up(a, b):
    return (a + b - 1) // b * b


# --------------------------------------------------------------------------- #
# phase A: per-row k-th largest logit + gathered logit                         #
# --------------------------------------------------------------------------- #
def _row_stats_kernel(x_ref, y_ref, sy_ref, t_ref, *, k, n_valid, row_tile):
    x = x_ref[...].astype(jnp.float32)            # (TM, C); cast in-kernel
    y = y_ref[...]                                # (TM, 1) int32
    m, c = x.shape

    col = jax.lax.broadcasted_iota(jnp.int32, (m, c), 1)

    # s_y[i] = x[i, y[i]]  — gather along the class/lane dim via mask + reduce.
    s_y = jnp.sum(jnp.where(col == y, x, 0.0), axis=-1, keepdims=True)     # (TM, 1)

    # s_topk[i] = k-th largest of row i (duplicates counted, like torch.sort):
    # remove exactly one occurrence of the current maximum k times, then take
    # the row max of what remains.
    # TODO(synk): for large k, replace the two cross-lane reduces/iteration with
    # a single argmax-based reduce (or a threshold/count selection) to cut XLU
    # pressure; for the small k here it is not the bottleneck.
    work = x
    for _ in range(k):
        row_max = jnp.max(work, axis=-1, keepdims=True)                    # (TM, 1)
        first_idx = jnp.min(jnp.where(work == row_max, col, c),
                            axis=-1, keepdims=True)                        # (TM, 1)
        work = jnp.where(col == first_idx, -jnp.inf, work)
    s_topk = jnp.max(work, axis=-1, keepdims=True)                         # (TM, 1)

    # Padded rows must contribute exactly zero in phase B:
    #   t -> -BIG, s_y -> +BIG   =>   max(t - s_y, 0) == 0 for any pairing.
    # The "+1" of the margin is folded into t here (saves one add per output
    # vreg in the O(N^2) phase).
    row = (pl.program_id(0) * row_tile
           + jax.lax.broadcasted_iota(jnp.int32, (m, 1), 0))
    valid = row < n_valid
    sy_ref[...] = jnp.where(valid, s_y, _BIG)
    t_ref[...] = jnp.where(valid, 1.0 + s_topk, -_BIG)


# --------------------------------------------------------------------------- #
# phase B: pairwise clamp + per-row accumulation                                #
# --------------------------------------------------------------------------- #
def _pairwise_kernel(sy_ref, t_ref, o_ref, acc_ref, *, chunk, acc_w):
    # sy_ref : (TI, 1) f32            (+BIG on padded rows)
    # t_ref  : (n_chunks, chunk) f32  row c holds 1 + s_topk for j in
    #                                 [c*chunk, (c+1)*chunk)  (-BIG on padding)
    # o_ref  : (TI, 1) f32            per-row sums over all j
    # acc_ref: (TI, acc_w) f32        lane-wise partial-sum accumulator (scratch)
    sy = sy_ref[...]                                   # hoisted once per i tile
    acc_ref[...] = jnp.zeros_like(acc_ref)
    n_chunks = t_ref.shape[0]

    def body(ci, carry):
        t = t_ref[pl.ds(ci, 1), :]                     # (1, chunk)
        margins = jnp.maximum(t - sy, 0.0)             # (TI, chunk) — VPU broadcast
        part = acc_ref[...]
        for s in range(chunk // acc_w):                # fold lanes into accumulator
            part = part + margins[:, s * acc_w:(s + 1) * acc_w]
        acc_ref[...] = part
        return carry

    jax.lax.fori_loop(0, n_chunks, body, 0)

    # Single cross-lane (XLU) reduce per i tile, deferred out of the hot loop.
    o_ref[...] = jnp.sum(acc_ref[...], axis=1, keepdims=True)


# --------------------------------------------------------------------------- #
# wrapper                                                                      #
# --------------------------------------------------------------------------- #
def loss5(x, y, k):
    """Pallas TPU implementation of Loss5(k).forward(x, y)."""
    n, c = x.shape
    if not 0 <= k < c:
        raise ValueError(f"k={k} must satisfy 0 <= k < C={c}")

    # ---- padding / tiling ----------------------------------------------------
    if n <= _PAIR_QUANT:
        n_pad = _round_up(n, _SUBLANE)
        ti = n_pad                                   # single phase-B grid step
        chunk = n_pad
    else:
        n_pad = _round_up(n, _PAIR_QUANT)
        ti = 1024 if n_pad % 1024 == 0 else _PAIR_QUANT
        chunk = _PAIR_QUANT
    acc_w = 128 if chunk % 128 == 0 else chunk

    # Phase-A row tile: adaptive to C, always divides n_pad (power-of-two walk).
    if n_pad <= _PAIR_QUANT:
        tm = n_pad
    else:
        budget_rows = max(_SUBLANE, _ROW_BUDGET_BYTES // (4 * c))
        tm = _SUBLANE
        while tm * 2 <= min(budget_rows, 2048) and n_pad % (tm * 2) == 0:
            tm *= 2

    y2 = y.reshape(n, 1).astype(jnp.int32)
    x_in = x                                          # native dtype (no wrapper upcast)
    if n_pad != n:
        x_in = jnp.pad(x, ((0, n_pad - n), (0, 0)))
        y2 = jnp.pad(y2, ((0, n_pad - n), (0, 0)))

    # ---- phase A: per-row stats ----------------------------------------------
    row_kernel = functools.partial(_row_stats_kernel, k=k, n_valid=n, row_tile=tm)
    stats_cost = pl.CostEstimate(
        flops=n_pad * c * (6 + 4 * k),
        transcendentals=0,
        bytes_accessed=n_pad * c * x_in.dtype.itemsize + 3 * n_pad * 4)
    s_y_col, t_col = pl.pallas_call(
        row_kernel,
        out_shape=(jax.ShapeDtypeStruct((n_pad, 1), jnp.float32),
                   jax.ShapeDtypeStruct((n_pad, 1), jnp.float32)),
        grid=(n_pad // tm,),
        in_specs=[pl.BlockSpec((tm, c), lambda i: (i, 0)),
                  pl.BlockSpec((tm, 1), lambda i: (i, 0))],
        out_specs=(pl.BlockSpec((tm, 1), lambda i: (i, 0)),
                   pl.BlockSpec((tm, 1), lambda i: (i, 0))),
        compiler_params=pltpu.CompilerParams(
            dimension_semantics=("parallel",),
            vmem_limit_bytes=_VMEM_LIMIT),
        cost_estimate=stats_cost,
    )(x_in, y2)

    # Tiny one-off relayout (4*N bytes) so phase B walks t along lanes while
    # chunk-indexing on the sublane axis.
    # TODO(synk): emit t lane-dense directly from phase A once the (tm,1)->(1,tm)
    # in-kernel relayout is verified to lower cleanly on all targets.
    t_2d = t_col.reshape(n_pad // chunk, chunk)

    # ---- phase B: pairwise clamp + reduce --------------------------------------
    pair_kernel = functools.partial(_pairwise_kernel, chunk=chunk, acc_w=acc_w)
    pair_cost = pl.CostEstimate(
        flops=3 * n_pad * n_pad,
        transcendentals=0,
        bytes_accessed=4 * 3 * n_pad)
    row_sums = pl.pallas_call(
        pair_kernel,
        out_shape=jax.ShapeDtypeStruct((n_pad, 1), jnp.float32),
        grid=(n_pad // ti,),
        in_specs=[pl.BlockSpec((ti, 1), lambda i: (i, 0)),
                  pl.BlockSpec((n_pad // chunk, chunk), lambda i: (0, 0))],
        out_specs=pl.BlockSpec((ti, 1), lambda i: (i, 0)),
        scratch_shapes=[pltpu.VMEM((ti, acc_w), jnp.float32)],
        compiler_params=pltpu.CompilerParams(
            dimension_semantics=("parallel",),   # i tiles are independent (2-TC split on v7x)
            vmem_limit_bytes=_VMEM_LIMIT),
        cost_estimate=pair_cost,
    )(s_y_col, t_2d)

    # Padded rows/cols contribute exactly 0; mean uses the original N.
    return jnp.sum(row_sums) / jnp.float32(n * n)


def loss5_ref(x, y, k):
    """Pure-JAX reference matching the PyTorch semantics."""
    sorted_desc = -jnp.sort(-x, axis=-1)
    s_topk = sorted_desc[:, k]                                   # (N,)
    s_y = jnp.take_along_axis(x, y.reshape(-1, 1), axis=-1)      # (N, 1)
    return jnp.mean(jnp.maximum(1.0 + s_topk - s_y, 0.0))        # (N, N) broadcast


if __name__ == "__main__":
    key = jax.random.PRNGKey(0)

    # Case 1: the module's natural toy shapes.
    K, N, C = 2, 8, 32
    kx, ky, key = jax.random.split(key, 3)
    x = jax.random.normal(kx, (N, C), dtype=jnp.float32)
    y = jax.random.randint(ky, (N,), 0, C, dtype=jnp.int32)
    out = loss5(x, y, K)
    jax.block_until_ready(out)
    ref = loss5_ref(x, y, K)
    assert jnp.allclose(out, ref, atol=1e-5, rtol=1e-5), (out, ref)

    # Case 2: exercises the row-padding path (N not a multiple of 8).
    K2, N2, C2 = 3, 12, 40
    kx2, ky2, key = jax.random.split(key, 3)
    x2 = jax.random.normal(kx2, (N2, C2), dtype=jnp.float32)
    y2 = jax.random.randint(ky2, (N2,), 0, C2, dtype=jnp.int32)
    out2 = loss5(x2, y2, K2)
    jax.block_until_ready(out2)
    ref2 = loss5_ref(x2, y2, K2)
    assert jnp.allclose(out2, ref2, atol=1e-5, rtol=1e-5), (out2, ref2)

    # Case 3: exercises the large-N path (multi-step phase-B grid, in-kernel
    # chunk loop, 512-quantum padding).
    K3, N3, C3 = 5, 1300, 64
    kx3, ky3, key = jax.random.split(key, 3)
    x3 = jax.random.normal(kx3, (N3, C3), dtype=jnp.float32)
    y3 = jax.random.randint(ky3, (N3,), 0, C3, dtype=jnp.int32)
    out3 = loss5(x3, y3, K3)
    jax.block_until_ready(out3)
    ref3 = loss5_ref(x3, y3, K3)
    assert jnp.allclose(out3, ref3, atol=1e-4, rtol=1e-4), (out3, ref3)

    print("KERNEL_OK")
</pallas_src>

<mosaic_0001>
module attributes {stable_mosaic.version = 11 : i64} {
  func.func @_row_stats_kernel(%arg0: i32, %arg1: memref<8x32xf32, #tpu.memory_space<vmem>>, %arg2: memref<8x1xi32, #tpu.memory_space<vmem>>, %arg3: memref<8x1xf32, #tpu.memory_space<vmem>>, %arg4: memref<8x1xf32, #tpu.memory_space<vmem>>) attributes {dimension_semantics = [#tpu.dimension_semantics<parallel>], iteration_bounds = array<i64: 1>, scalar_prefetch = 0 : i64, scratch_operands = 0 : i64, tpu.core_type = #tpu.core_type<tc>, window_params = [{transform_indices = @transform_0, window_bounds = array<i64: 8, 32>}, {transform_indices = @transform_1, window_bounds = array<i64: 8, 1>}, {transform_indices = @transform_2, window_bounds = array<i64: 8, 1>}, {transform_indices = @transform_3, window_bounds = array<i64: 8, 1>}]} {
    %c0 = arith.constant 0 : index
    %c0_0 = arith.constant 0 : index
    %0 = vector.load %arg1[%c0, %c0_0] : memref<8x32xf32, #tpu.memory_space<vmem>>, vector<8x32xf32>
    %c0_1 = arith.constant 0 : index
    %c0_2 = arith.constant 0 : index
    %1 = vector.load %arg2[%c0_1, %c0_2] : memref<8x1xi32, #tpu.memory_space<vmem>>, vector<8x1xi32>
    %2 = tpu.iota {dimensions = array<i32: 1>} : vector<8x32xi32>
    %3 = vector.broadcast %1 : vector<8x1xi32> to vector<8x32xi32>
    %4 = arith.cmpi eq, %2, %3 : vector<8x32xi32>
    %cst = arith.constant 0.000000e+00 : f32
    %5 = vector.broadcast %cst : f32 to vector<8x32xf32>
    %6 = arith.select %4, %0, %5 : vector<8x32xi1>, vector<8x32xf32>
    %cst_3 = arith.constant dense<0.000000e+00> : vector<8xf32>
    %7 = vector.multi_reduction <add>, %6, %cst_3 [1] : vector<8x32xf32> to vector<8xf32>
    %8 = vector.shape_cast %7 : vector<8xf32> to vector<8x1xf32>
    %cst_4 = arith.constant dense<0xFF800000> : vector<8xf32>
    %9 = vector.multi_reduction <maximumf>, %0, %cst_4 [1] : vector<8x32xf32> to vector<8xf32>
    %10 = vector.shape_cast %9 : vector<8xf32> to vector<8x1xf32>
    %11 = vector.broadcast %10 : vector<8x1xf32> to vector<8x32xf32>
    %12 = arith.cmpf oeq, %0, %11 : vector<8x32xf32>
    %c32_i32 = arith.constant 32 : i32
    %13 = vector.broadcast %c32_i32 : i32 to vector<8x32xi32>
    %14 = arith.select %12, %2, %13 : vector<8x32xi1>, vector<8x32xi32>
    %cst_5 = arith.constant dense<2147483647> : vector<8xi32>
    %15 = vector.multi_reduction <minsi>, %14, %cst_5 [1] : vector<8x32xi32> to vector<8xi32>
    %16 = vector.shape_cast %15 : vector<8xi32> to vector<8x1xi32>
    %17 = vector.broadcast %16 : vector<8x1xi32> to vector<8x32xi32>
    %18 = arith.cmpi eq, %2, %17 : vector<8x32xi32>
    %cst_6 = arith.constant 0xFF800000 : f32
    %19 = vector.broadcast %cst_6 : f32 to vector<8x32xf32>
    %20 = arith.select %18, %19, %0 : vector<8x32xi1>, vector<8x32xf32>
    %cst_7 = arith.constant dense<0xFF800000> : vector<8xf32>
    %21 = vector.multi_reduction <maximumf>, %20, %cst_7 [1] : vector<8x32xf32> to vector<8xf32>
    %22 = vector.shape_cast %21 : vector<8xf32> to vector<8x1xf32>
    %23 = vector.broadcast %22 : vector<8x1xf32> to vector<8x32xf32>
    %24 = arith.cmpf oeq, %20, %23 : vector<8x32xf32>
    %c32_i32_8 = arith.constant 32 : i32
    %25 = vector.broadcast %c32_i32_8 : i32 to vector<8x32xi32>
    %26 = arith.select %24, %2, %25 : vector<8x32xi1>, vector<8x32xi32>
    %cst_9 = arith.constant dense<2147483647> : vector<8xi32>
    %27 = vector.multi_reduction <minsi>, %26, %cst_9 [1] : vector<8x32xi32> to vector<8xi32>
    %28 = vector.shape_cast %27 : vector<8xi32> to vector<8x1xi32>
    %29 = vector.broadcast %28 : vector<8x1xi32> to vector<8x32xi32>
    %30 = arith.cmpi eq, %2, %29 : vector<8x32xi32>
    %cst_10 = arith.constant 0xFF800000 : f32
    %31 = vector.broadcast %cst_10 : f32 to vector<8x32xf32>
    %32 = arith.select %30, %31, %20 : vector<8x32xi1>, vector<8x32xf32>
    %cst_11 = arith.constant dense<0xFF800000> : vector<8xf32>
    %33 = vector.multi_reduction <maximumf>, %32, %cst_11 [1] : vector<8x32xf32> to vector<8xf32>
    %34 = vector.shape_cast %33 : vector<8xf32> to vector<8x1xf32>
    %c8_i32 = arith.constant 8 : i32
    %35 = arith.muli %arg0, %c8_i32 : i32
    %36 = tpu.iota {dimensions = array<i32: 0>} : vector<8x1xi32>
    %37 = vector.broadcast %35 : i32 to vector<8x1xi32>
    %38 = arith.addi %37, %36 : vector<8x1xi32>
    %c8_i32_12 = arith.constant 8 : i32
    %39 = vector.broadcast %c8_i32_12 : i32 to vector<8x1xi32>
    %40 = arith.cmpi slt, %38, %39 : vector<8x1xi32>
    %cst_13 = arith.constant 1.000000e+30 : f32
    %41 = vector.broadcast %cst_13 : f32 to vector<8x1xf32>
    %42 = arith.select %40, %8, %41 : vector<8x1xi1>, vector<8x1xf32>
    %c0_14 = arith.constant 0 : index
    %c0_15 = arith.constant 0 : index
    %43 = vector.load %arg3[%c0_14, %c0_15] : memref<8x1xf32, #tpu.memory_space<vmem>>, vector<8x1xf32>
    tpu.vector_store %arg3[%c0_14, %c0_15], %42 {strides = array<i32>} : memref<8x1xf32, #tpu.memory_space<vmem>>, vector<8x1xf32>,
    %cst_16 = arith.constant 1.000000e+00 : f32
    %44 = vector.broadcast %cst_16 : f32 to vector<8x1xf32>
    %45 = arith.addf %44, %34 : vector<8x1xf32>
    %cst_17 = arith.constant -1.000000e+30 : f32
    %46 = vector.broadcast %cst_17 : f32 to vector<8x1xf32>
    %47 = arith.select %40, %45, %46 : vector<8x1xi1>, vector<8x1xf32>
    %c0_18 = arith.constant 0 : index
    %c0_19 = arith.constant 0 : index
    %48 = vector.load %arg4[%c0_18, %c0_19] : memref<8x1xf32, #tpu.memory_space<vmem>>, vector<8x1xf32>
    tpu.vector_store %arg4[%c0_18, %c0_19], %47 {strides = array<i32>} : memref<8x1xf32, #tpu.memory_space<vmem>>, vector<8x1xf32>,
    return
  }
  func.func @transform_0(%arg0: i32) -> (i32, i32) {
    %c0_i32 = arith.constant 0 : i32
    %c0_i32_0 = arith.constant 0 : i32
    return %arg0, %c0_i32 : i32, i32
  }
  func.func @transform_1(%arg0: i32) -> (i32, i32) {
    %c0_i32 = arith.constant 0 : i32
    %c0_i32_0 = arith.constant 0 : i32
    return %arg0, %c0_i32 : i32, i32
  }
  func.func @transform_2(%arg0: i32) -> (i32, i32) {
    %c0_i32 = arith.constant 0 : i32
    %c0_i32_0 = arith.constant 0 : i32
    return %arg0, %c0_i32 : i32, i32
  }
  func.func @transform_3(%arg0: i32) -> (i32, i32) {
    %c0_i32 = arith.constant 0 : i32
    %c0_i32_0 = arith.constant 0 : i32
    return %arg0, %c0_i32 : i32, i32
  }
}

</mosaic_0001>

<bundles_post_ra>
// kernel: tpu_custom_call.1
= control target key start
LH: loop header
LB: loop body
LE: loop exit
PB: predicated region body
PF: predicated region fallthrough
CT: control target
= control target key end

     0   :  { %vm22_vm0 = vcmask 261120   ;;  %v15_v2 = vlaneseq  ;;  %v95_v25 = vmov 0   ;;  %vm80_vm8 = vcmask 7168   ;;  %s134_s0 = inlined_call_operand.vmem [shape: f32[8,32], index: 0, kind: input, shape index: {}]   ;;  %s135_s1 = inlined_call_operand.vmem [shape: s32[8,1], index: 1, kind: input, shape index: {}]   ;;  %s136_s3 = inlined_call_operand.vmem [shape: f32[8,1], index: 3, kind: output, shape index: {1}]   ;;  %s137_s2 = inlined_call_operand.vmem [shape: f32[8,1], index: 2, kind: output, shape index: {0}]  }
   0x1   :  { %v13_v0 = vld [vmem:[%s134_s0] sm:$0xff]  ;;  %94 = vset.pattern.permute.xlu0 %v95_v25 }
   0x2   :  { %v26_v1 = vsel %vm22_vm0, %v13_v0, -inf  ;;  %v16_v3 = vand.u32 127, %v15_v2  ;;  %v14_v26 = vld [vmem:[%s135_s1] sm:$0xff] }
   0x3   :  { %27 = vmax.xlane.f32.xlu0 %v26_v1 }
  0x90   :  { %v28_v4 = vpop.xlane.xlu0 %27 }
  0x91   :  { %vm29_vm1 = vcmp.eq.f32.partialorder %v13_v0, %v28_v4 }
  0x92   :  { %v30_v5 = vsel %vm29_vm1, %v16_v3, 32 }
  0x93   :  { %v31_v6 = vsel %vm22_vm0, %v30_v5, 2147483647 }
  0x94   :  { %v33_v7 = vshra.s32 %v31_v6, 16  ;;  %v32_v9 = vand.u32 65535, %v31_v6 }
  0x96   :  { %v35_v8 = vcvt.s32.f32 %v33_v7  ;;  %v34_v11 = vcvt.s32.f32 %v32_v9 }
  0x98   :  { %36 = vmin.xlane.f32.xlu0 %v35_v8 }
 0x125   :  { %v37_v10 = vpop.xlane.xlu0 %36 }
 0x126   :  { %vm38_vm2 = vcmp.eq.f32.partialorder %v35_v8, %v37_v10  ;;  %v43_v13 = vcvt.f32.s32 %v37_v10 }
 0x127   :  { %v39_v12 = vsel %vm38_vm2, %v34_v11, inf }
 0x128   :  { %40 = vmin.xlane.f32.xlu1 %v39_v12  ;;  %v44_v15 = vshll.u32 %v43_v13, 16 }
 0x1b5   :  { %v41_v14 = vpop.xlane.xlu1 %40 }
 0x1b6   :  { %v42_v16 = vcvt.f32.s32 %v41_v14 }
 0x1b8   :  { %v45_v17 = vadd.s32 %v44_v15, %v42_v16 }
 0x1ba   :  { %vm46_vm3 = vcmp.eq.s32.totalorder %v16_v3, %v45_v17 }
 0x1bb   :  { %v47_v18 = vsel %vm46_vm3, -inf, %v13_v0 }
 0x1bc   :  { %v48_v19 = vsel %vm22_vm0, %v47_v18, -inf }
 0x1bd   :  { %49 = vmax.xlane.f32.xlu1 %v48_v19 }
 0x24a   :  { %v50_v20 = vpop.xlane.xlu1 %49 }
 0x24b   :  { %vm51_vm4 = vcmp.eq.f32.partialorder %v47_v18, %v50_v20 }
 0x24c   :  { %v52_v21 = vsel %vm51_vm4, %v16_v3, 32 }
 0x24d   :  { %v53_v22 = vsel %vm22_vm0, %v52_v21, 2147483647 }
 0x24e   :  { %v55_v23 = vshra.s32 %v53_v22, 16  ;;  %v54_v27 = vand.u32 65535, %v53_v22 }
 0x250   :  { %v57_v24 = vcvt.s32.f32 %v55_v23  ;;  %v56_v29 = vcvt.s32.f32 %v54_v27 }
 0x252   :  { %58 = vmin.xlane.f32.xlu0 %v57_v24 }
 0x268   :  { %18 = vperm.xlu0 %94, %v14_v26  }
 0x2df   :  { %v59_v28 = vpop.xlane.xlu0 %58 }
 0x2e0   :  { %vm60_vm5 = vcmp.eq.f32.partialorder %v57_v24, %v59_v28  ;;  %v65_v31 = vcvt.f32.s32 %v59_v28 }
 0x2e1   :  { %v61_v30 = vsel %vm60_vm5, %v56_v29, inf }
 0x2e2   :  { %62 = vmin.xlane.f32.xlu1 %v61_v30  ;;  %v66_v34 = vshll.u32 %v65_v31, 16 }
 0x2e7   :  { %v19_v33 = vpop.permute.xlu0 %18 }
 0x2e8   :  { %vm20_vm6 = vcmp.eq.s32.totalorder %v16_v3, %v19_v33 }
 0x2e9   :  { %v21_v38 = vsel %vm20_vm6, %v13_v0, 0.0 }
 0x2ea   :  { %v23_v40 = vsel %vm22_vm0, %v21_v38, 0.0 }
 0x36f   :  { %v63_v32 = vpop.xlane.xlu1 %62 }
 0x370   :  { %v64_v35 = vcvt.f32.s32 %v63_v32 }
 0x372   :  { %v67_v36 = vadd.s32 %v66_v34, %v64_v35 }
 0x374   :  { %vm68_vm7 = vcmp.eq.s32.totalorder %v16_v3, %v67_v36 }
 0x375   :  { %v69_v37 = vsel %vm68_vm7, -inf, %v47_v18 }
 0x376   :  { %v70_v39 = vsel %vm22_vm0, %v69_v37, -inf }
 0x377   :  { %71 = vmax.xlane.f32.xlu1 %v70_v39 }
 0x37b   :  { %24 = vadd.xlane.f32.xlu1 %v23_v40 }
 0x404   :  { %v72_v41 = vpop.xlane.xlu1 %71 }
 0x405   :  { %v82_v42 = vadd.f32 1.0, %v72_v41 }
 0x407   :  { %84 = vst.msk [vmem:[%s136_s3] sm:$0xff] %vm80_vm8, %v82_v42 }
 0x408   :  { %v25_v43 = vpop.xlane.xlu1 %24 }
 0x409   :  { %81 = vst.msk [vmem:[%s137_s2] sm:$0xff] %vm80_vm8, %v25_v43 }

</bundles_post_ra>
